<compile_context>
chip_gen: v6e
topology: v6e:2x2x1
jax: 0.10.0
libtpu: 0.0.40
codegen_flags: <defaults>
</compile_context>

<pallas_src>
import functools
import math

import jax
import jax.numpy as jnp
from jax import lax
from jax.experimental import pallas as pl
from jax.experimental.pallas import tpu as pltpu


def _round_up(x, m):
    return (x + m - 1) // m * m


def _unrolled_loop(lo, hi, body, unroll=8):
    """Static-bound side-effecting loop with partial unroll (LLO visibility)."""
    if hi <= lo:
        return

    def wrapped(t, carry):
        body(t)
        return carry

    lax.fori_loop(lo, hi, wrapped, 0, unroll=min(unroll, hi - lo))


# --------------------------------------------------------------------------- #
# RESIDENT path: embedding table lives in VMEM (constant-index pipelined input)
# --------------------------------------------------------------------------- #
def _embed_resident_kernel(ids_ref, emb_ref, o_ref, *,
                           tokens_per_block, vocab, scale):
    base = pl.program_id(0) * tokens_per_block

    def row(t):
        tok = jnp.clip(ids_ref[base + t], 0, vocab - 1)
        o_ref[pl.ds(t, 1), :] = (emb_ref[pl.ds(tok, 1), :] * scale).astype(o_ref.dtype)

    _unrolled_loop(0, tokens_per_block, row, unroll=8)


# --------------------------------------------------------------------------- #
# HBM path: per-row DMA gather straight into the output block, deep DMA ring
# --------------------------------------------------------------------------- #
def _embed_hbm_gather_kernel(ids_ref, emb_hbm, o_ref, sems, *,
                             tokens_per_block, depth, vocab, scale):
    T = tokens_per_block
    base = pl.program_id(0) * T

    def _start(t, tok):
        pltpu.make_async_copy(
            emb_hbm.at[pl.ds(tok, 1), :],
            o_ref.at[pl.ds(t, 1), :],
            sems.at[t % depth],
        ).start()

    def _retire(t):
        # Reconstructed descriptor: dst slice + semaphore match the started copy
        # exactly (same (1, d_model_p) byte count), only those matter for wait.
        pltpu.make_async_copy(
            emb_hbm.at[pl.ds(0, 1), :],
            o_ref.at[pl.ds(t, 1), :],
            sems.at[t % depth],
        ).wait()
        # Scale the retired row in place while later DMAs are still in flight:
        # hides the VPU pass under DMA latency instead of a bulk tail pass.
        o_ref[pl.ds(t, 1), :] = (o_ref[pl.ds(t, 1), :] * scale).astype(o_ref.dtype)

    def _prologue(t):
        tok = jnp.clip(ids_ref[base + t], 0, vocab - 1)
        _start(t, tok)

    def _steady(t):
        # Hoist the SMEM id read ahead of the wait (.wait() breaks sst->sld fwd).
        tok = jnp.clip(ids_ref[base + t], 0, vocab - 1)
        _retire(t - depth)
        _start(t, tok)

    def _tail(t):
        _retire(t)

    _unrolled_loop(0, depth, _prologue, unroll=8)          # fill the ring
    _unrolled_loop(depth, T, _steady, unroll=8)            # steady state
    _unrolled_loop(T - depth, T, _tail, unroll=8)          # drain the ring


# --------------------------------------------------------------------------- #
# Wrapper
# --------------------------------------------------------------------------- #
def input_embeddings(ids, emb_table, *, tokens_per_block=128, dma_depth=32,
                     vmem_table_budget_bytes=4 * 1024 * 1024):
    """ids: (B, S) int, emb_table: (vocab, d_model) -> (B, S, d_model)."""
    B, S = ids.shape
    vocab, d_model = emb_table.shape
    scale = math.sqrt(d_model)  # == self.embedding.embedding_dim ** 0.5

    n_tok = B * S
    n_tok8 = _round_up(n_tok, 8)

    # Output tile must be (8,128)-aligned: T multiple of 8, d_model padded to 128.
    T = min(tokens_per_block, n_tok8)
    if n_tok8 <= tokens_per_block and n_tok > 8:
        # Small (decode-like) workloads: split into >=2 blocks so both of v7x's
        # TensorCores get work under the "parallel" axis (no-op on v5e/v6e).
        T = _round_up((n_tok + 1) // 2, 8)
    T = _round_up(T, 8)
    depth = max(1, min(dma_depth, T))

    d_model_p = _round_up(d_model, 128)
    n_tok_p = _round_up(n_tok, T)
    n_blocks = n_tok_p // T

    flat_ids = ids.reshape(n_tok).astype(jnp.int32)
    if n_tok_p != n_tok:
        flat_ids = jnp.pad(flat_ids, (0, n_tok_p - n_tok))
    emb_p = emb_table
    if d_model_p != d_model:
        # In a real model the parameter would be padded once at init time.
        emb_p = jnp.pad(emb_table, ((0, 0), (0, d_model_p - d_model)))

    itemsize = jnp.dtype(emb_table.dtype).itemsize
    table_bytes = vocab * d_model_p * itemsize
    out_block_bytes = T * d_model_p * itemsize
    # Conservative so the double-buffered table + output blocks fit the default
    # scoped VMEM on every generation (16 MiB v5e / 32 MiB v6e,v7x); raise it
    # (together with vmem_limit_bytes) for bigger tables.
    resident = table_bytes <= vmem_table_budget_bytes

    if resident:
        kernel = functools.partial(
            _embed_resident_kernel,
            tokens_per_block=T, vocab=vocab, scale=scale)
        in_specs = [pl.BlockSpec((vocab, d_model_p), lambda i, ids: (0, 0))]
        scratch_shapes = []
        bytes_accessed = table_bytes + 2 * n_blocks * out_block_bytes + 4 * n_tok_p
    else:
        kernel = functools.partial(
            _embed_hbm_gather_kernel,
            tokens_per_block=T, depth=depth, vocab=vocab, scale=scale)
        in_specs = [pl.BlockSpec(memory_space=pl.ANY)]      # table stays in HBM
        scratch_shapes = [pltpu.SemaphoreType.DMA((depth,))]  # DMA ring sems
        bytes_accessed = 2 * n_tok_p * d_model_p * itemsize + 4 * n_tok_p

    out = pl.pallas_call(
        kernel,
        out_shape=jax.ShapeDtypeStruct((n_tok_p, d_model_p), emb_table.dtype),
        grid_spec=pltpu.PrefetchScalarGridSpec(
            num_scalar_prefetch=1,               # flat_ids -> SMEM
            grid=(n_blocks,),
            in_specs=in_specs,
            out_specs=pl.BlockSpec((T, d_model_p), lambda i, ids: (i, 0)),
            scratch_shapes=scratch_shapes,
        ),
        compiler_params=pltpu.CompilerParams(
            dimension_semantics=("parallel",)),
        cost_estimate=pl.CostEstimate(
            flops=n_tok_p * d_model_p,
            transcendentals=0,
            bytes_accessed=bytes_accessed,
        ),
    )(flat_ids, emb_p)

    return out[:n_tok, :d_model].reshape(B, S, d_model)


if __name__ == "__main__":
    key = jax.random.PRNGKey(0)
    k_emb, k_ids = jax.random.split(key)

    # Aligned, representative small shapes (d_model multiple of 128).
    batch, seq = 2, 8
    vocab_size, d_model = 512, 128

    emb_table = jax.random.normal(k_emb, (vocab_size, d_model), dtype=jnp.float32)
    ids = jax.random.randint(k_ids, (batch, seq), 0, vocab_size, dtype=jnp.int32)

    # 1) Resident-table fast path (table fits VMEM budget).
    out = jax.block_until_ready(input_embeddings(ids, emb_table))
    ref = jnp.take(emb_table, ids, axis=0) * math.sqrt(d_model)
    assert out.shape == (batch, seq, d_model)
    assert jnp.allclose(out, ref, atol=1e-5, rtol=1e-5)

    # 2) Unaligned shapes: exercises token padding and d_model padding paths.
    k_emb2, k_ids2 = jax.random.split(jax.random.PRNGKey(0), 2)
    vocab2, d_model2, b2, s2 = 100, 96, 2, 5
    emb2 = jax.random.normal(k_emb2, (vocab2, d_model2), dtype=jnp.float32)
    ids2 = jax.random.randint(k_ids2, (b2, s2), 0, vocab2, dtype=jnp.int32)
    out2 = jax.block_until_ready(input_embeddings(ids2, emb2))
    ref2 = jnp.take(emb2, ids2, axis=0) * math.sqrt(d_model2)
    assert out2.shape == (b2, s2, d_model2)
    assert jnp.allclose(out2, ref2, atol=1e-5, rtol=1e-5)

    # 3) Force the HBM-gather path (big-table code path) on the same data.
    out3 = jax.block_until_ready(
        input_embeddings(ids, emb_table, vmem_table_budget_bytes=0))
    assert jnp.allclose(out3, ref, atol=1e-5, rtol=1e-5)

    print("KERNEL_OK")
</pallas_src>

<mosaic_0001>
module attributes {stable_mosaic.version = 11 : i64} {
  func.func @_embed_resident_kernel(%arg0: i32, %arg1: memref<16xi32, #tpu.memory_space<smem>>, %arg2: memref<512x128xf32, #tpu.memory_space<vmem>>, %arg3: memref<8x128xf32, #tpu.memory_space<vmem>>) attributes {dimension_semantics = [#tpu.dimension_semantics<parallel>], iteration_bounds = array<i64: 2>, scalar_prefetch = 1 : i64, scratch_operands = 0 : i64, tpu.core_type = #tpu.core_type<tc>, window_params = [{pipeline_mode = #tpu.pipeline_mode<synchronous>, transform_indices = @transform_0, window_bounds = array<i64: 512, 128>}, {transform_indices = @transform_1, window_bounds = array<i64: 8, 128>}]} {
    %c8_i32 = arith.constant 8 : i32
    %0 = arith.muli %arg0, %c8_i32 : i32
    %c0_i32 = arith.constant 0 : i32
    %1 = arith.addi %0, %c0_i32 : i32
    %2 = arith.index_cast %1 : i32 to index
    %3 = memref.load %arg1[%2] : memref<16xi32, #tpu.memory_space<smem>>
    %c0_i32_0 = arith.constant 0 : i32
    %c511_i32 = arith.constant 511 : i32
    %4 = arith.maxsi %c0_i32_0, %3 : i32
    %5 = arith.minsi %c511_i32, %4 : i32
    %6 = arith.index_cast %5 : i32 to index
    %c0 = arith.constant 0 : index
    %7 = vector.load %arg2[%6, %c0] : memref<512x128xf32, #tpu.memory_space<vmem>>, vector<1x128xf32>
    %cst = arith.constant 11.3137083 : f32
    %8 = vector.broadcast %cst : f32 to vector<1x128xf32>
    %9 = arith.mulf %7, %8 : vector<1x128xf32>
    %10 = arith.index_cast %c0_i32 : i32 to index
    %c0_1 = arith.constant 0 : index
    %11 = vector.load %arg3[%10, %c0_1] : memref<8x128xf32, #tpu.memory_space<vmem>>, vector<1x128xf32>
    tpu.vector_store %arg3[%10, %c0_1], %9 {strides = array<i32>} : memref<8x128xf32, #tpu.memory_space<vmem>>, vector<1x128xf32>,
    %c1_i32 = arith.constant 1 : i32
    %12 = arith.addi %0, %c1_i32 : i32
    %13 = arith.index_cast %12 : i32 to index
    %14 = memref.load %arg1[%13] : memref<16xi32, #tpu.memory_space<smem>>
    %c0_i32_2 = arith.constant 0 : i32
    %c511_i32_3 = arith.constant 511 : i32
    %15 = arith.maxsi %c0_i32_2, %14 : i32
    %16 = arith.minsi %c511_i32_3, %15 : i32
    %17 = arith.index_cast %16 : i32 to index
    %c0_4 = arith.constant 0 : index
    %18 = vector.load %arg2[%17, %c0_4] : memref<512x128xf32, #tpu.memory_space<vmem>>, vector<1x128xf32>
    %cst_5 = arith.constant 11.3137083 : f32
    %19 = vector.broadcast %cst_5 : f32 to vector<1x128xf32>
    %20 = arith.mulf %18, %19 : vector<1x128xf32>
    %21 = arith.index_cast %c1_i32 : i32 to index
    %c0_6 = arith.constant 0 : index
    %22 = vector.load %arg3[%21, %c0_6] : memref<8x128xf32, #tpu.memory_space<vmem>>, vector<1x128xf32>
    tpu.vector_store %arg3[%21, %c0_6], %20 {strides = array<i32>} : memref<8x128xf32, #tpu.memory_space<vmem>>, vector<1x128xf32>,
    %c2_i32 = arith.constant 2 : i32
    %23 = arith.addi %0, %c2_i32 : i32
    %24 = arith.index_cast %23 : i32 to index
    %25 = memref.load %arg1[%24] : memref<16xi32, #tpu.memory_space<smem>>
    %c0_i32_7 = arith.constant 0 : i32
    %c511_i32_8 = arith.constant 511 : i32
    %26 = arith.maxsi %c0_i32_7, %25 : i32
    %27 = arith.minsi %c511_i32_8, %26 : i32
    %28 = arith.index_cast %27 : i32 to index
    %c0_9 = arith.constant 0 : index
    %29 = vector.load %arg2[%28, %c0_9] : memref<512x128xf32, #tpu.memory_space<vmem>>, vector<1x128xf32>
    %cst_10 = arith.constant 11.3137083 : f32
    %30 = vector.broadcast %cst_10 : f32 to vector<1x128xf32>
    %31 = arith.mulf %29, %30 : vector<1x128xf32>
    %32 = arith.index_cast %c2_i32 : i32 to index
    %c0_11 = arith.constant 0 : index
    %33 = vector.load %arg3[%32, %c0_11] : memref<8x128xf32, #tpu.memory_space<vmem>>, vector<1x128xf32>
    tpu.vector_store %arg3[%32, %c0_11], %31 {strides = array<i32>} : memref<8x128xf32, #tpu.memory_space<vmem>>, vector<1x128xf32>,
    %c3_i32 = arith.constant 3 : i32
    %34 = arith.addi %0, %c3_i32 : i32
    %35 = arith.index_cast %34 : i32 to index
    %36 = memref.load %arg1[%35] : memref<16xi32, #tpu.memory_space<smem>>
    %c0_i32_12 = arith.constant 0 : i32
    %c511_i32_13 = arith.constant 511 : i32
    %37 = arith.maxsi %c0_i32_12, %36 : i32
    %38 = arith.minsi %c511_i32_13, %37 : i32
    %39 = arith.index_cast %38 : i32 to index
    %c0_14 = arith.constant 0 : index
    %40 = vector.load %arg2[%39, %c0_14] : memref<512x128xf32, #tpu.memory_space<vmem>>, vector<1x128xf32>
    %cst_15 = arith.constant 11.3137083 : f32
    %41 = vector.broadcast %cst_15 : f32 to vector<1x128xf32>
    %42 = arith.mulf %40, %41 : vector<1x128xf32>
    %43 = arith.index_cast %c3_i32 : i32 to index
    %c0_16 = arith.constant 0 : index
    %44 = vector.load %arg3[%43, %c0_16] : memref<8x128xf32, #tpu.memory_space<vmem>>, vector<1x128xf32>
    tpu.vector_store %arg3[%43, %c0_16], %42 {strides = array<i32>} : memref<8x128xf32, #tpu.memory_space<vmem>>, vector<1x128xf32>,
    %c4_i32 = arith.constant 4 : i32
    %45 = arith.addi %0, %c4_i32 : i32
    %46 = arith.index_cast %45 : i32 to index
    %47 = memref.load %arg1[%46] : memref<16xi32, #tpu.memory_space<smem>>
    %c0_i32_17 = arith.constant 0 : i32
    %c511_i32_18 = arith.constant 511 : i32
    %48 = arith.maxsi %c0_i32_17, %47 : i32
    %49 = arith.minsi %c511_i32_18, %48 : i32
    %50 = arith.index_cast %49 : i32 to index
    %c0_19 = arith.constant 0 : index
    %51 = vector.load %arg2[%50, %c0_19] : memref<512x128xf32, #tpu.memory_space<vmem>>, vector<1x128xf32>
    %cst_20 = arith.constant 11.3137083 : f32
    %52 = vector.broadcast %cst_20 : f32 to vector<1x128xf32>
    %53 = arith.mulf %51, %52 : vector<1x128xf32>
    %54 = arith.index_cast %c4_i32 : i32 to index
    %c0_21 = arith.constant 0 : index
    %55 = vector.load %arg3[%54, %c0_21] : memref<8x128xf32, #tpu.memory_space<vmem>>, vector<1x128xf32>
    tpu.vector_store %arg3[%54, %c0_21], %53 {strides = array<i32>} : memref<8x128xf32, #tpu.memory_space<vmem>>, vector<1x128xf32>,
    %c5_i32 = arith.constant 5 : i32
    %56 = arith.addi %0, %c5_i32 : i32
    %57 = arith.index_cast %56 : i32 to index
    %58 = memref.load %arg1[%57] : memref<16xi32, #tpu.memory_space<smem>>
    %c0_i32_22 = arith.constant 0 : i32
    %c511_i32_23 = arith.constant 511 : i32
    %59 = arith.maxsi %c0_i32_22, %58 : i32
    %60 = arith.minsi %c511_i32_23, %59 : i32
    %61 = arith.index_cast %60 : i32 to index
    %c0_24 = arith.constant 0 : index
    %62 = vector.load %arg2[%61, %c0_24] : memref<512x128xf32, #tpu.memory_space<vmem>>, vector<1x128xf32>
    %cst_25 = arith.constant 11.3137083 : f32
    %63 = vector.broadcast %cst_25 : f32 to vector<1x128xf32>
    %64 = arith.mulf %62, %63 : vector<1x128xf32>
    %65 = arith.index_cast %c5_i32 : i32 to index
    %c0_26 = arith.constant 0 : index
    %66 = vector.load %arg3[%65, %c0_26] : memref<8x128xf32, #tpu.memory_space<vmem>>, vector<1x128xf32>
    tpu.vector_store %arg3[%65, %c0_26], %64 {strides = array<i32>} : memref<8x128xf32, #tpu.memory_space<vmem>>, vector<1x128xf32>,
    %c6_i32 = arith.constant 6 : i32
    %67 = arith.addi %0, %c6_i32 : i32
    %68 = arith.index_cast %67 : i32 to index
    %69 = memref.load %arg1[%68] : memref<16xi32, #tpu.memory_space<smem>>
    %c0_i32_27 = arith.constant 0 : i32
    %c511_i32_28 = arith.constant 511 : i32
    %70 = arith.maxsi %c0_i32_27, %69 : i32
    %71 = arith.minsi %c511_i32_28, %70 : i32
    %72 = arith.index_cast %71 : i32 to index
    %c0_29 = arith.constant 0 : index
    %73 = vector.load %arg2[%72, %c0_29] : memref<512x128xf32, #tpu.memory_space<vmem>>, vector<1x128xf32>
    %cst_30 = arith.constant 11.3137083 : f32
    %74 = vector.broadcast %cst_30 : f32 to vector<1x128xf32>
    %75 = arith.mulf %73, %74 : vector<1x128xf32>
    %76 = arith.index_cast %c6_i32 : i32 to index
    %c0_31 = arith.constant 0 : index
    %77 = vector.load %arg3[%76, %c0_31] : memref<8x128xf32, #tpu.memory_space<vmem>>, vector<1x128xf32>
    tpu.vector_store %arg3[%76, %c0_31], %75 {strides = array<i32>} : memref<8x128xf32, #tpu.memory_space<vmem>>, vector<1x128xf32>,
    %c7_i32 = arith.constant 7 : i32
    %78 = arith.addi %0, %c7_i32 : i32
    %79 = arith.index_cast %78 : i32 to index
    %80 = memref.load %arg1[%79] : memref<16xi32, #tpu.memory_space<smem>>
    %c0_i32_32 = arith.constant 0 : i32
    %c511_i32_33 = arith.constant 511 : i32
    %81 = arith.maxsi %c0_i32_32, %80 : i32
    %82 = arith.minsi %c511_i32_33, %81 : i32
    %83 = arith.index_cast %82 : i32 to index
    %c0_34 = arith.constant 0 : index
    %84 = vector.load %arg2[%83, %c0_34] : memref<512x128xf32, #tpu.memory_space<vmem>>, vector<1x128xf32>
    %cst_35 = arith.constant 11.3137083 : f32
    %85 = vector.broadcast %cst_35 : f32 to vector<1x128xf32>
    %86 = arith.mulf %84, %85 : vector<1x128xf32>
    %87 = arith.index_cast %c7_i32 : i32 to index
    %c0_36 = arith.constant 0 : index
    %88 = vector.load %arg3[%87, %c0_36] : memref<8x128xf32, #tpu.memory_space<vmem>>, vector<1x128xf32>
    tpu.vector_store %arg3[%87, %c0_36], %86 {strides = array<i32>} : memref<8x128xf32, #tpu.memory_space<vmem>>, vector<1x128xf32>,
    %c8_i32_37 = arith.constant 8 : i32
    return
  }
  func.func @transform_0(%arg0: i32, %arg1: memref<16xi32, #tpu.memory_space<smem>>) -> (i32, i32) {
    %c0_i32 = arith.constant 0 : i32
    %c0_i32_0 = arith.constant 0 : i32
    %c0_i32_1 = arith.constant 0 : i32
    return %c0_i32, %c0_i32_0 : i32, i32
  }
  func.func @transform_1(%arg0: i32, %arg1: memref<16xi32, #tpu.memory_space<smem>>) -> (i32, i32) {
    %c0_i32 = arith.constant 0 : i32
    %c0_i32_0 = arith.constant 0 : i32
    return %arg0, %c0_i32 : i32, i32
  }
}

</mosaic_0001>

<bundles_post_ra>
// kernel: tpu_custom_call.1
= control target key start
LH: loop header
LB: loop body
LE: loop exit
PB: predicated region body
PF: predicated region fallthrough
CT: control target
= control target key end

     0   :  { %s498_s9 = smov [#allocation3]   ;;  %s661_s0 = inlined_call_operand.hbm [shape: s32[16], index: 0, kind: input, shape index: {}]   ;;  %s662_s1 = inlined_call_operand.hbm [shape: f32[512,128], index: 1, kind: input, shape index: {}]   ;;  %s663_s2 = inlined_call_operand.hbm [shape: f32[16,128], index: 2, kind: output, shape index: {}]  }
   0x1   :  { %8 = dma.hbm_to_smem %s661_s0, 16, %s498_s9, [#allocation2] }
   0x2   :  { %472 = dma.done.wait [#allocation2], 16 }
   0x3   :  { %473 = vsyncadd [#allocation2], 4294967280 }
   0x4   :  { %10 = sfence }
   0x5   :  { %11 = vsyncpa [#allocation5], 0 }
   0x6   :  { %12 = vsyncpa [#allocation6], 0 }
   0x7   :  { %14 = vsyncpa [#allocation6 + $0x1], 0  ;;  %s521_s12 = smov 0   ;;  %s523_s13 = smov 0  }
   0x8   :  { %s525_s14 = smov 0   ;;  %s527_s15 = smov 0  }
   0x9 LB: > { %s542_s0 = sadd.s32 4294967295, %s496_s15   ;;  %s276_s16 = sadd.s32 4294967294, %s496_s15   ;;  %s496_s15 = sphi %s527_s15, %s671_s15   ;;  %s492_s14 = sphi %s525_s14, %s670_s14   ;;  %s488_s13 = sphi %s523_s13, %s669_s13   ;;  %s484_s12 = sphi %s521_s12, %s668_s12  }
   0xa   : > { %s546_s17 = sadd.s32 1, %s496_s15   ;;  %s48_s18 = sadd.s32 1, %s492_s14 }
   0xb   : > { %s45_s19 = ssub.s32 %s496_s15, %s546_s17  ;;  %p58_p0 = scmp.ne.s32.totalorder %s492_s14, %s488_s13 }
   0xc   : > { %p46_p1 = scmp.eq.s32.totalorder %s45_s19, 0  ;;  %p59_p2 = scmp.eq.s32.totalorder %s542_s0, 1 }
   0xd   : > { %p64_p3 = scmp.ne.s32.totalorder %s488_s13, %s484_s12  ;;  %p65_p4 = scmp.eq.s32.totalorder %s276_s16, 1 }
   0xe   : > { %s557_s20 = scalar_select %p46_p1, %s492_s14, %s48_s18  }
   0xf   : > { %p559_p5 = por %p59_p2, %p58_p0  ;;  %p563_p6 = por %p65_p4, %p64_p3 }
  0x10   : > { %p277_p7 = scmp.ge.s32.totalorder %s496_s15, 1  ;;  %p72_p8 = scmp.lt.s32.totalorder %s496_s15, 3 }
  0x11   : > { %s665_s22 = scalar_select %p563_p6, 1, 0 }
  0x12   : > { %p357_p9 = scmp.eq.s32.totalorder %s542_s0, 0  ;;  %p570_p10 = pnand %p277_p7, %p72_p8 }
  0x13   : > { %s499_s24 = smov [#allocation4]  }
  0x14   : > { %s84_s25 = sshll.u32 %s499_s24, 4  ;;  %p349_p11 = pneg %p570_p10  ;;  %s85_s25 = int_to_ptr.vmem [resolvable:$true] %s84_s25 }
  0x15   : > { %s415_s26 = scalar_lea.vmem %s85_s25, 8192  ;;  %p423_p3 = scmp.lt.s32.totalorder %s85_s25, %s85_s25 }
  0x16   : > { %p350_p12 = pnand %p357_p9, %p349_p11  ;;  %p416_p0 = scmp.ne.s32.totalorder %s85_s25, %s415_s26 }
  0x17   : > { %p424_p4 = scmp.lt.s32.totalorder %s415_s26, %s415_s26 }
  0x18   : > { %p406_p13 = pneg %p350_p12 }
  0x19   : > { %p425_p6 = por %p424_p4, %p423_p3 }
  0x1a   : > { %p418_p1 = pnand %p416_p0, %p406_p13 }
  0x1c   : > { %p419_p2 = pneg %p418_p1 }
  0x1e   : > { %p426_p7 = pnand %p425_p6, %p419_p2 }
  0x20   : > { %429 = shalt.err (!%p426_p7)
}
  0x21   : > { %s500_s27 = smov 128   ;;  %s501_s28 = smov 8  }
  0x22   : > { %352 = dma.hbm_to_vmem [thread:$0]  (!%p350_p12), %s662_s1, 8192, %s85_s25, [#allocation5], %s500_s27, %s500_s27, %s501_s28  }
  0x23   : > { %100 = sbr.rel (%p570_p10) target bundleno = 95 (0x5f), region = 24 }
  0x28   : > { %475 = dma.done.wait (%p357_p9), [#allocation5], 8192  }
  0x29   : > { %477 = vsyncadd (%p357_p9), [#allocation5], 4294959104  ;;  %s112_s3 = sand.u32 1, %s488_s13   ;;  %s589_s4 = sshll.u32 %s542_s0, 3 }
  0x2a   : > { %s281_s5 = sshll.u32 %s112_s3, 3  ;;  %s116_s6 = sld [smem:[#allocation3 + %s589_s4]] }
  0x2b   : > { %s125_s7 = sadd.s32 1, %s589_s4  ;;  %s135_s8 = sadd.s32 2, %s589_s4 }
  0x2c   : > { %s126_s9 = sld [smem:[#allocation3 + %s125_s7]]  ;;  %s145_s10 = sadd.s32 3, %s589_s4 }
  0x2d   : > { %s136_s11 = sld [smem:[#allocation3 + %s135_s8]]  ;;  %s155_s16 = sadd.s32 4, %s589_s4 }
  0x2e   : > { %s598_s18 = sld [smem:[#allocation3 + %s145_s10]]  ;;  %s165_s19 = sadd.s32 5, %s589_s4 }
  0x2f   : > { %s601_s23 = sld [smem:[#allocation3 + %s155_s16]]  ;;  %s175_s24 = sadd.s32 6, %s589_s4 }
  0x30   : > { %p117_p6 = scmp.gt.s32.totalorder %s116_s6, 0  ;;  %p283_p8 = scmp.lt.s32.totalorder %s116_s6, 511 }
  0x31   : > { %s604_s27 = scalar_lea.vmem [#allocation7], %s281_s5  ;;  %s185_s7 = sadd.s32 7, %s589_s4 }
  0x32   : > { %s673_s6 = smov (!%p117_p6, %s116_s6), 0  ;;  %p127_p9 = scmp.gt.s32.totalorder %s126_s9, 0 }
  0x33   : > { %p288_p10 = scmp.lt.s32.totalorder %s126_s9, 511  ;;  %s675_s6 = smov (!%p283_p8, %s673_s6), 511 }
  0x34   : > { %s677_s9 = smov (!%p127_p9, %s126_s9), 0  ;;  %p137_p11 = scmp.gt.s32.totalorder %s136_s11, 0 }
  0x35   : > { %s121_s25 = scalar_lea.vmem [#allocation4], %s675_s6  ;;  %s679_s9 = smov (!%p288_p10, %s677_s9), 511 }
  0x36   : > { %v122_v0 = vld [vmem:[%s121_s25] sm:$0x1]  ;;  %s138_s26 = scalar_select %p137_p11, %s136_s11, 0 }
  0x37   : > { %v123_v1 = vmul.f32 11.313708, %v122_v0  ;;  %p293_p12 = scmp.lt.s32.totalorder %s136_s11, 511  ;;  %s131_s28 = scalar_lea.vmem [#allocation4], %s679_s9 }
  0x38   : > { %v132_v2 = vld [vmem:[%s131_s28] sm:$0x1]  ;;  %p147_p13 = scmp.gt.s32.totalorder %s598_s18, 0  ;;  %p298_p0 = scmp.lt.s32.totalorder %s598_s18, 511 }
  0x39   : > { %124 = vst [vmem:[%s604_s27] sm:$0x1] %v123_v1  ;;  %v133_v3 = vmul.f32 11.313708, %v132_v2  ;;  %s681_s26 = smov (!%p293_p12, %s138_s26), 511  ;;  %p157_p1 = scmp.gt.s32.totalorder %s601_s23, 0 }
  0x3a   : > { %s683_s18 = smov (!%p147_p13, %s598_s18), 0  ;;  %s141_s29 = scalar_lea.vmem [#allocation4], %s681_s26 }
  0x3b   : > { %134 = vst [vmem:[%s604_s27 + $0x1] sm:$0x1] %v133_v3  ;;  %v142_v4 = vld [vmem:[%s141_s29] sm:$0x1]  ;;  %s685_s18 = smov (!%p298_p0, %s683_s18), 511  ;;  %p303_p2 = scmp.lt.s32.totalorder %s601_s23, 511 }
  0x3c   : > { %v143_v5 = vmul.f32 11.313708, %v142_v4  ;;  %s158_s30 = scalar_select %p157_p1, %s601_s23, 0 }
  0x3d   : > { %s151_s5 = scalar_lea.vmem [#allocation4], %s685_s18  ;;  %s166_s6 = sld [smem:[#allocation3 + %s165_s19]] }
  0x3e   : > { %144 = vst [vmem:[%s604_s27 + $0x2] sm:$0x1] %v143_v5  ;;  %v152_v6 = vld [vmem:[%s151_s5] sm:$0x1]  ;;  %s687_s30 = smov (!%p303_p2, %s158_s30), 511  ;;  %s176_s8 = sld [smem:[#allocation3 + %s175_s24]] }
  0x3f   : > { %v153_v7 = vmul.f32 11.313708, %v152_v6  ;;  %s161_s9 = scalar_lea.vmem [#allocation4], %s687_s30  ;;  %s186_s10 = sld [smem:[#allocation3 + %s185_s7]] }
  0x40   : > { %v162_v8 = vld [vmem:[%s161_s9] sm:$0x1]  ;;  %s324_s18 = sshll.u32 %s542_s0, 7  ;;  %s209_s19 = sshll.u32 %s604_s27, 4  ;;  %s210_s19 = int_to_ptr.vmem [resolvable:$true] %s209_s19 }
  0x41   : > { %154 = vst [vmem:[%s604_s27 + $0x3] sm:$0x1] %v153_v7  ;;  %v163_v9 = vmul.f32 11.313708, %v162_v8  ;;  %s207_s26 = scalar_lea.hbm %s663_s2, %s324_s18  ;;  %s196_s28 = scalar_lea.sflag [#allocation6], %s112_s3 }
  0x42   : > { %s430_s29 = scalar_lea.vmem %s210_s19, 128  ;;  %s502_s30 = smov [#allocation7]  }
  0x43   : > { %p167_p3 = scmp.gt.s32.totalorder %s166_s6, 0  ;;  %p308_p4 = scmp.lt.s32.totalorder %s166_s6, 511  ;;  %164 = vst [vmem:[%s604_s27 + $0x4] sm:$0x1] %v163_v9 }
  0x44   : > { %p177_p7 = scmp.gt.s32.totalorder %s176_s8, 0  ;;  %p313_p6 = scmp.lt.s32.totalorder %s176_s8, 511 }
  0x45   : > { %s689_s6 = smov (!%p167_p3, %s166_s6), 0  ;;  %p187_p8 = scmp.gt.s32.totalorder %s186_s10, 0 }
  0x46   : > { %s691_s6 = smov (!%p308_p4, %s689_s6), 511  ;;  %s693_s8 = smov (!%p177_p7, %s176_s8), 0 }
  0x47   : > { %s171_s4 = scalar_lea.vmem [#allocation4], %s691_s6  ;;  %s695_s8 = smov (!%p313_p6, %s693_s8), 511 }
  0x48   : > { %v172_v10 = vld [vmem:[%s171_s4] sm:$0x1]  ;;  %s188_s11 = scalar_select %p187_p8, %s186_s10, 0 }
  0x49   : > { %v173_v11 = vmul.f32 11.313708, %v172_v10  ;;  %p318_p9 = scmp.lt.s32.totalorder %s186_s10, 511  ;;  %s181_s16 = scalar_lea.vmem [#allocation4], %s695_s8 }
  0x4a   : > { %v182_v12 = vld [vmem:[%s181_s16] sm:$0x1]  ;;  %p431_p10 = scmp.ne.s32.totalorder %s210_s19, %s430_s29  ;;  %s434_s0 = sshll.u32 %s502_s30, 4  ;;  %s435_s0 = int_to_ptr.vmem [resolvable:$false] %s434_s0 }
  0x4b   : > { %174 = vst [vmem:[%s604_s27 + $0x5] sm:$0x1] %v173_v11  ;;  %v183_v13 = vmul.f32 11.313708, %v182_v12  ;;  %s697_s11 = smov (!%p318_p9, %s188_s11), 511  ;;  %s436_s5 = scalar_lea.vmem %s435_s0, 256 }
  0x4c   : > { %s191_s23 = scalar_lea.vmem [#allocation4], %s697_s11  ;;  %p432_p11 = pnand %p431_p10, %p559_p5 }
  0x4d   : > { %184 = vst [vmem:[%s604_s27 + $0x6] sm:$0x1] %v183_v13  ;;  %v192_v14 = vld [vmem:[%s191_s23] sm:$0x1]  ;;  %p437_p13 = scmp.lt.s32.totalorder %s210_s19, %s435_s0  ;;  %p438_p0 = scmp.lt.s32.totalorder %s436_s5, %s430_s29 }
  0x4e   : > { %v193_v15 = vmul.f32 11.313708, %v192_v14  ;;  %p433_p12 = pneg %p432_p11 }
  0x4f   : > { %p439_p1 = por %p438_p0, %p437_p13 }
  0x50   : > { %194 = vst [vmem:[%s604_s27 + $0x7] sm:$0x1] %v193_v15 }
  0x51   : > { %p440_p2 = pnand %p439_p1, %p433_p12 }
  0x53   : > { %443 = shalt.err (!%p440_p2)
}
  0x54   : > { %s444_s6 = scalar_lea.hbm %s207_s26, 128  ;;  %s448_s7 = scalar_lea.hbm %s663_s2, 256 }
  0x55   : > { %p445_p3 = scmp.ne.s32.totalorder %s207_s26, %s444_s6  ;;  %p449_p6 = scmp.lt.s32.totalorder %s207_s26, %s663_s2 }
  0x56   : > { %p450_p8 = scmp.lt.s32.totalorder %s448_s7, %s444_s6 }
  0x57   : > { %p446_p4 = pnand %p445_p3, %p559_p5 }
  0x58   : > { %p451_p9 = por %p450_p8, %p449_p6 }
  0x59   : > { %p447_p7 = pneg %p446_p4 }
  0x5b   : > { %p452_p10 = pnand %p451_p9, %p447_p7 }
  0x5d   : > { %455 = shalt.err (!%p452_p10)
}
  0x5e   : > { %347 = dma.vmem_to_hbm [thread:$0]  (%p559_p5), %s210_s19, 128, %s207_s26, %s196_s28  }
  0x5f PF: > { %p359_p11 = scmp.ge.s32.totalorder %s496_s15, 2  ;;  %s221_s10 = sand.u32 1, %s484_s12  }
  0x60   : > { %p667_p12 = scmp.ne.s32.totalorder %s665_s22, 0  ;;  %s222_s4 = scalar_lea.sflag [#allocation6], %s221_s10 }
  0x62   : > { %p354_p13 = pnand %p359_p11, %p667_p12 }
  0x64   : > { %p355_p0 = pneg %p354_p13 }
  0x66   : > { %479 = dma.done.wait (%p355_p0), %s222_s4, 128  }
  0x67   : > { %481 = vsyncadd (%p355_p0), %s222_s4, 4294967168  ;;  %p17_p1 = scmp.ge.s32.totalorder %s546_s17, 4   ;;  %s668_s12 = smov %s488_s13 }
  0x68   : > { %s669_s13 = smov %s492_s14  ;;  %s670_s14 = smov %s557_s20 }
  0x69   : > { %s671_s15 = smov %s546_s17  ;;  %19 = sbr.rel (!%p17_p1) target bundleno = 9 (0x9), region = 69 }
  0x6e   :  { %227 = vsyncpa [#allocation5], 1 }
  0x6f   :  { %229 = vsyncpa [#allocation5 + $0x1], 1 }
  0x70   :  { %230 = vsyncpa [#allocation6], 1 }
  0x71   :  { %232 = vsyncpa [#allocation6 + $0x1], 1 }

</bundles_post_ra>
